<compile_context>
chip_gen: v7x
topology: tpu7x:2x2x1
jax: 0.10.0
libtpu: 0.0.40
codegen_flags: <defaults>
</compile_context>

<pallas_src>
import jax
import jax.numpy as jnp
from jax.experimental import pallas as pl
from jax.experimental.pallas import tpu as pltpu


_VPU_K_THRESHOLD = 16  # contraction dims <= this are done as broadcast-FMA on the VPU


def _cdiv(a, b):
    return -(-a // b)


def _mm(w, h):
    """W @ h.  w: (m, k) f32 array, h: (k, bb) f32 array.

    For small (static) k this is an unrolled sum of outer products: the
    (m,1)*(1,bb) broadcasts hit the VPU (lane bcast) / XLU (sublane bcast),
    which have slack, instead of paying an MXU push->pop round trip.
    """
    k = w.shape[1]
    if k <= _VPU_K_THRESHOLD:
        acc = w[:, 0:1] * h[0:1, :]
        for j in range(1, k):
            acc = acc + w[:, j:j + 1] * h[j:j + 1, :]
        return acc
    return jnp.dot(w, h, preferred_element_type=jnp.float32)


def _make_kernel(num_mid):
    """Kernel body for a given (static) number of middle hidden->hidden layers."""
    if num_mid > 0:
        def kernel(x_ref, w_in_ref, b_in_ref, w_mid_ref, b_mid_ref,
                   w_out_ref, b_out_ref, o_ref):
            # x_ref: (in_sz, bb); activations kept as (features, batch) so the
            # batch (lane) axis stays dense end-to-end.
            h = jnp.maximum(_mm(w_in_ref[...], x_ref[...]) + b_in_ref[...], 0.0)
            # Static unroll; per-layer Ref indexing keeps only one layer's
            # weights live at a time.
            for i in range(num_mid):
                h = jnp.maximum(_mm(w_mid_ref[i], h) + b_mid_ref[i], 0.0)
            y = _mm(w_out_ref[...], h) + b_out_ref[...]
            o_ref[...] = y.astype(o_ref.dtype)
    else:
        def kernel(x_ref, w_in_ref, b_in_ref, w_out_ref, b_out_ref, o_ref):
            h = jnp.maximum(_mm(w_in_ref[...], x_ref[...]) + b_in_ref[...], 0.0)
            y = _mm(w_out_ref[...], h) + b_out_ref[...]
            o_ref[...] = y.astype(o_ref.dtype)
    return kernel


def relu_fnn(x, params, *, block_b=2048, min_tiles=1):
    """Forward pass of ReLUFNN.

    x: (B, input_size).  params use the PyTorch-native layouts:
      weights (out_features, in_features), biases (out_features, 1).

    block_b : max batch-tile width (lanes).  Compute per tile is trivial, so
              prefer the fewest / biggest tiles (v5e/v6e).
    min_tiles: set to 2 on v7x with large B so the "parallel" batch grid axis
              can shard across its two TensorCores.
    """
    w_in, b_in, w_mid, b_mid, w_out, b_out = params
    B, in_sz = x.shape
    out_sz = w_out.shape[0]
    num_mid = w_mid.shape[0]

    # Batch onto the lane (last) axis.  in_sz == 1 -> pure reshape, no
    # transpose copy; otherwise a (small) transpose pass over (B, in_sz).
    x_t = x.reshape(1, B) if in_sz == 1 else x.T  # (in_sz, B)

    # Lane-aligned batch tile; pad (cheap at these feature sizes) only if needed.
    lane = 128
    n_tiles = max(int(min_tiles), _cdiv(B, block_b))
    bb = _cdiv(_cdiv(B, n_tiles), lane) * lane
    Bp = n_tiles * bb
    if Bp != B:
        x_t = jnp.pad(x_t, ((0, 0), (0, Bp - B)))

    # Weights/biases: resident in VMEM once, single-buffered (no pipelining).
    weight_spec = pl.BlockSpec(memory_space=pltpu.MemorySpace.VMEM)

    in_specs = [pl.BlockSpec((in_sz, bb), lambda i: (0, i)),   # x^T batch tile
                weight_spec, weight_spec]                      # w_in, b_in
    args = [x_t, w_in, b_in]
    if num_mid > 0:
        in_specs += [weight_spec, weight_spec]                 # w_mid, b_mid stacks
        args += [w_mid, b_mid]
    in_specs += [weight_spec, weight_spec]                     # w_out, b_out
    args += [w_out, b_out]

    y_t = pl.pallas_call(
        _make_kernel(num_mid),
        out_shape=jax.ShapeDtypeStruct((out_sz, Bp), x.dtype),
        grid_spec=pltpu.PrefetchScalarGridSpec(
            num_scalar_prefetch=0,
            grid=(n_tiles,),
            in_specs=in_specs,
            out_specs=pl.BlockSpec((out_sz, bb), lambda i: (0, i)),
        ),
        compiler_params=pltpu.CompilerParams(
            dimension_semantics=("parallel",),
            vmem_limit_bytes=32 * 1024 * 1024,
        ),
    )(*args)

    # Back to (B, out_sz).  out_sz == 1 -> pure reshape (no transpose copy).
    y_t = y_t[:, :B]
    return y_t.reshape(B, 1) if out_sz == 1 else y_t.T


def init_params(key, input_size, hidden_size, num_hidden_layers, output_size):
    """PyTorch-style init U(-1/sqrt(fan_in), 1/sqrt(fan_in)); weight layout (out, in)."""
    def linear(k, fan_in, fan_out):
        kw, kb = jax.random.split(k)
        bound = 1.0 / float(fan_in) ** 0.5
        w = jax.random.uniform(kw, (fan_out, fan_in), jnp.float32, -bound, bound)
        b = jax.random.uniform(kb, (fan_out, 1), jnp.float32, -bound, bound)
        return w, b

    keys = jax.random.split(key, num_hidden_layers + 1)
    w_in, b_in = linear(keys[0], input_size, hidden_size)

    num_mid = num_hidden_layers - 1
    w_mids, b_mids = [], []
    for i in range(num_mid):
        w, b = linear(keys[1 + i], hidden_size, hidden_size)
        w_mids.append(w)
        b_mids.append(b)
    if num_mid > 0:
        w_mid = jnp.stack(w_mids, axis=0)
        b_mid = jnp.stack(b_mids, axis=0)
    else:
        w_mid = jnp.zeros((0, hidden_size, hidden_size), jnp.float32)
        b_mid = jnp.zeros((0, hidden_size, 1), jnp.float32)

    w_out, b_out = linear(keys[-1], hidden_size, output_size)
    return w_in, b_in, w_mid, b_mid, w_out, b_out


def relu_fnn_reference(x, params):
    w_in, b_in, w_mid, b_mid, w_out, b_out = params
    h = jnp.maximum(x @ w_in.T + b_in.T, 0.0)
    for i in range(w_mid.shape[0]):
        h = jnp.maximum(h @ w_mid[i].T + b_mid[i].T, 0.0)
    return h @ w_out.T + b_out.T


if __name__ == "__main__":
    # Module defaults: input_size=1, hidden_size=4, num_hidden_layers=10, output_size=1
    input_size, hidden_size, num_hidden_layers, output_size = 1, 4, 10, 1
    batch = 256

    key = jax.random.PRNGKey(0)
    k_params, k_x, k_x2, k_x3 = jax.random.split(key, 4)
    params = init_params(k_params, input_size, hidden_size, num_hidden_layers, output_size)
    x = jax.random.normal(k_x, (batch, input_size), jnp.float32)

    # 1) Default fast path: single lane-aligned tile (bb = 256), VPU FMA layers.
    y = jax.block_until_ready(relu_fnn(x, params))
    y_ref = relu_fnn_reference(x, params)
    assert y.shape == (batch, output_size)
    assert jnp.allclose(y, y_ref, atol=1e-5, rtol=1e-5)

    # 2) Multi-tile "parallel" grid path (what you'd use on v7x): 2 tiles of 128.
    y_p = jax.block_until_ready(relu_fnn(x, params, min_tiles=2))
    assert jnp.allclose(y_p, y_ref, atol=1e-5, rtol=1e-5)

    # 3) Ragged, non-lane-aligned batch: padded to 128 lanes, sliced back.
    x3 = jax.random.normal(k_x3, (100, input_size), jnp.float32)
    y3 = jax.block_until_ready(relu_fnn(x3, params))
    assert jnp.allclose(y3, relu_fnn_reference(x3, params), atol=1e-5, rtol=1e-5)

    # 4) Degenerate num_hidden_layers == 1 (no mid layers).
    params1 = init_params(k_params, input_size, hidden_size, 1, output_size)
    x2 = jax.random.normal(k_x2, (64, input_size), jnp.float32)
    y2 = jax.block_until_ready(relu_fnn(x2, params1))
    assert jnp.allclose(y2, relu_fnn_reference(x2, params1), atol=1e-5, rtol=1e-5)

    print("KERNEL_OK")
</pallas_src>

<mosaic_0001>
module attributes {stable_mosaic.version = 11 : i64} {
  func.func @kernel(%arg0: i32, %arg1: memref<1x256xf32, #tpu.memory_space<vmem>>, %arg2: memref<4x1xf32, #tpu.memory_space<vmem>>, %arg3: memref<4x1xf32, #tpu.memory_space<vmem>>, %arg4: memref<9x4x4xf32, #tpu.memory_space<vmem>>, %arg5: memref<9x4x1xf32, #tpu.memory_space<vmem>>, %arg6: memref<1x4xf32, #tpu.memory_space<vmem>>, %arg7: memref<1x1xf32, #tpu.memory_space<vmem>>, %arg8: memref<1x256xf32, #tpu.memory_space<vmem>>) attributes {dimension_semantics = [#tpu.dimension_semantics<parallel>], iteration_bounds = array<i64: 1>, scalar_prefetch = 0 : i64, scratch_operands = 0 : i64, tpu.core_type = #tpu.core_type<tc>, window_params = [{transform_indices = @transform_0, window_bounds = array<i64: 1, 256>}, {pipeline_mode = #tpu.pipeline_mode<synchronous>, transform_indices = @transform_1, window_bounds = array<i64: 4, 1>}, {pipeline_mode = #tpu.pipeline_mode<synchronous>, transform_indices = @transform_2, window_bounds = array<i64: 4, 1>}, {pipeline_mode = #tpu.pipeline_mode<synchronous>, transform_indices = @transform_3, window_bounds = array<i64: 9, 4, 4>}, {pipeline_mode = #tpu.pipeline_mode<synchronous>, transform_indices = @transform_4, window_bounds = array<i64: 9, 4, 1>}, {pipeline_mode = #tpu.pipeline_mode<synchronous>, transform_indices = @transform_5, window_bounds = array<i64: 1, 4>}, {pipeline_mode = #tpu.pipeline_mode<synchronous>, transform_indices = @transform_6, window_bounds = array<i64: 1, 1>}, {transform_indices = @transform_7, window_bounds = array<i64: 1, 256>}]} {
    %c0 = arith.constant 0 : index
    %c0_0 = arith.constant 0 : index
    %0 = vector.load %arg2[%c0, %c0_0] : memref<4x1xf32, #tpu.memory_space<vmem>>, vector<4x1xf32>
    %c0_1 = arith.constant 0 : index
    %c0_2 = arith.constant 0 : index
    %1 = vector.load %arg1[%c0_1, %c0_2] : memref<1x256xf32, #tpu.memory_space<vmem>>, vector<1x256xf32>
    %2 = vector.broadcast %0 : vector<4x1xf32> to vector<4x256xf32>
    %3 = vector.broadcast %1 : vector<1x256xf32> to vector<4x256xf32>
    %4 = arith.mulf %2, %3 : vector<4x256xf32>
    %c0_3 = arith.constant 0 : index
    %c0_4 = arith.constant 0 : index
    %5 = vector.load %arg3[%c0_3, %c0_4] : memref<4x1xf32, #tpu.memory_space<vmem>>, vector<4x1xf32>
    %6 = vector.broadcast %5 : vector<4x1xf32> to vector<4x256xf32>
    %7 = arith.addf %4, %6 : vector<4x256xf32>
    %cst = arith.constant 0.000000e+00 : f32
    %8 = vector.broadcast %cst : f32 to vector<4x256xf32>
    %9 = arith.maximumf %7, %8 : vector<4x256xf32>
    %c0_5 = arith.constant 0 : index
    %c0_6 = arith.constant 0 : index
    %c0_7 = arith.constant 0 : index
    %10 = vector.load %arg4[%c0_5, %c0_6, %c0_7] : memref<9x4x4xf32, #tpu.memory_space<vmem>>, vector<1x4x4xf32>
    %11 = vector.shape_cast %10 : vector<1x4x4xf32> to vector<4x4xf32>
    %12 = vector.extract_strided_slice %11 {offsets = [0, 0], sizes = [4, 1], strides = [1, 1]} : vector<4x4xf32> to vector<4x1xf32>
    %13 = vector.extract_strided_slice %9 {offsets = [0, 0], sizes = [1, 256], strides = [1, 1]} : vector<4x256xf32> to vector<1x256xf32>
    %14 = vector.broadcast %12 : vector<4x1xf32> to vector<4x256xf32>
    %15 = vector.broadcast %13 : vector<1x256xf32> to vector<4x256xf32>
    %16 = arith.mulf %14, %15 : vector<4x256xf32>
    %17 = vector.extract_strided_slice %11 {offsets = [0, 1], sizes = [4, 1], strides = [1, 1]} : vector<4x4xf32> to vector<4x1xf32>
    %18 = vector.extract_strided_slice %9 {offsets = [1, 0], sizes = [1, 256], strides = [1, 1]} : vector<4x256xf32> to vector<1x256xf32>
    %19 = vector.broadcast %17 : vector<4x1xf32> to vector<4x256xf32>
    %20 = vector.broadcast %18 : vector<1x256xf32> to vector<4x256xf32>
    %21 = arith.mulf %19, %20 : vector<4x256xf32>
    %22 = arith.addf %16, %21 : vector<4x256xf32>
    %23 = vector.extract_strided_slice %11 {offsets = [0, 2], sizes = [4, 1], strides = [1, 1]} : vector<4x4xf32> to vector<4x1xf32>
    %24 = vector.extract_strided_slice %9 {offsets = [2, 0], sizes = [1, 256], strides = [1, 1]} : vector<4x256xf32> to vector<1x256xf32>
    %25 = vector.broadcast %23 : vector<4x1xf32> to vector<4x256xf32>
    %26 = vector.broadcast %24 : vector<1x256xf32> to vector<4x256xf32>
    %27 = arith.mulf %25, %26 : vector<4x256xf32>
    %28 = arith.addf %22, %27 : vector<4x256xf32>
    %29 = vector.extract_strided_slice %11 {offsets = [0, 3], sizes = [4, 1], strides = [1, 1]} : vector<4x4xf32> to vector<4x1xf32>
    %30 = vector.extract_strided_slice %9 {offsets = [3, 0], sizes = [1, 256], strides = [1, 1]} : vector<4x256xf32> to vector<1x256xf32>
    %31 = vector.broadcast %29 : vector<4x1xf32> to vector<4x256xf32>
    %32 = vector.broadcast %30 : vector<1x256xf32> to vector<4x256xf32>
    %33 = arith.mulf %31, %32 : vector<4x256xf32>
    %34 = arith.addf %28, %33 : vector<4x256xf32>
    %c0_8 = arith.constant 0 : index
    %c0_9 = arith.constant 0 : index
    %c0_10 = arith.constant 0 : index
    %35 = vector.load %arg5[%c0_8, %c0_9, %c0_10] : memref<9x4x1xf32, #tpu.memory_space<vmem>>, vector<1x4x1xf32>
    %36 = vector.shape_cast %35 : vector<1x4x1xf32> to vector<4x1xf32>
    %37 = vector.broadcast %36 : vector<4x1xf32> to vector<4x256xf32>
    %38 = arith.addf %34, %37 : vector<4x256xf32>
    %cst_11 = arith.constant 0.000000e+00 : f32
    %39 = vector.broadcast %cst_11 : f32 to vector<4x256xf32>
    %40 = arith.maximumf %38, %39 : vector<4x256xf32>
    %c1 = arith.constant 1 : index
    %c0_12 = arith.constant 0 : index
    %c0_13 = arith.constant 0 : index
    %41 = vector.load %arg4[%c1, %c0_12, %c0_13] : memref<9x4x4xf32, #tpu.memory_space<vmem>>, vector<1x4x4xf32>
    %42 = vector.shape_cast %41 : vector<1x4x4xf32> to vector<4x4xf32>
    %43 = vector.extract_strided_slice %42 {offsets = [0, 0], sizes = [4, 1], strides = [1, 1]} : vector<4x4xf32> to vector<4x1xf32>
    %44 = vector.extract_strided_slice %40 {offsets = [0, 0], sizes = [1, 256], strides = [1, 1]} : vector<4x256xf32> to vector<1x256xf32>
    %45 = vector.broadcast %43 : vector<4x1xf32> to vector<4x256xf32>
    %46 = vector.broadcast %44 : vector<1x256xf32> to vector<4x256xf32>
    %47 = arith.mulf %45, %46 : vector<4x256xf32>
    %48 = vector.extract_strided_slice %42 {offsets = [0, 1], sizes = [4, 1], strides = [1, 1]} : vector<4x4xf32> to vector<4x1xf32>
    %49 = vector.extract_strided_slice %40 {offsets = [1, 0], sizes = [1, 256], strides = [1, 1]} : vector<4x256xf32> to vector<1x256xf32>
    %50 = vector.broadcast %48 : vector<4x1xf32> to vector<4x256xf32>
    %51 = vector.broadcast %49 : vector<1x256xf32> to vector<4x256xf32>
    %52 = arith.mulf %50, %51 : vector<4x256xf32>
    %53 = arith.addf %47, %52 : vector<4x256xf32>
    %54 = vector.extract_strided_slice %42 {offsets = [0, 2], sizes = [4, 1], strides = [1, 1]} : vector<4x4xf32> to vector<4x1xf32>
    %55 = vector.extract_strided_slice %40 {offsets = [2, 0], sizes = [1, 256], strides = [1, 1]} : vector<4x256xf32> to vector<1x256xf32>
    %56 = vector.broadcast %54 : vector<4x1xf32> to vector<4x256xf32>
    %57 = vector.broadcast %55 : vector<1x256xf32> to vector<4x256xf32>
    %58 = arith.mulf %56, %57 : vector<4x256xf32>
    %59 = arith.addf %53, %58 : vector<4x256xf32>
    %60 = vector.extract_strided_slice %42 {offsets = [0, 3], sizes = [4, 1], strides = [1, 1]} : vector<4x4xf32> to vector<4x1xf32>
    %61 = vector.extract_strided_slice %40 {offsets = [3, 0], sizes = [1, 256], strides = [1, 1]} : vector<4x256xf32> to vector<1x256xf32>
    %62 = vector.broadcast %60 : vector<4x1xf32> to vector<4x256xf32>
    %63 = vector.broadcast %61 : vector<1x256xf32> to vector<4x256xf32>
    %64 = arith.mulf %62, %63 : vector<4x256xf32>
    %65 = arith.addf %59, %64 : vector<4x256xf32>
    %c1_14 = arith.constant 1 : index
    %c0_15 = arith.constant 0 : index
    %c0_16 = arith.constant 0 : index
    %66 = vector.load %arg5[%c1_14, %c0_15, %c0_16] : memref<9x4x1xf32, #tpu.memory_space<vmem>>, vector<1x4x1xf32>
    %67 = vector.shape_cast %66 : vector<1x4x1xf32> to vector<4x1xf32>
    %68 = vector.broadcast %67 : vector<4x1xf32> to vector<4x256xf32>
    %69 = arith.addf %65, %68 : vector<4x256xf32>
    %cst_17 = arith.constant 0.000000e+00 : f32
    %70 = vector.broadcast %cst_17 : f32 to vector<4x256xf32>
    %71 = arith.maximumf %69, %70 : vector<4x256xf32>
    %c2 = arith.constant 2 : index
    %c0_18 = arith.constant 0 : index
    %c0_19 = arith.constant 0 : index
    %72 = vector.load %arg4[%c2, %c0_18, %c0_19] : memref<9x4x4xf32, #tpu.memory_space<vmem>>, vector<1x4x4xf32>
    %73 = vector.shape_cast %72 : vector<1x4x4xf32> to vector<4x4xf32>
    %74 = vector.extract_strided_slice %73 {offsets = [0, 0], sizes = [4, 1], strides = [1, 1]} : vector<4x4xf32> to vector<4x1xf32>
    %75 = vector.extract_strided_slice %71 {offsets = [0, 0], sizes = [1, 256], strides = [1, 1]} : vector<4x256xf32> to vector<1x256xf32>
    %76 = vector.broadcast %74 : vector<4x1xf32> to vector<4x256xf32>
    %77 = vector.broadcast %75 : vector<1x256xf32> to vector<4x256xf32>
    %78 = arith.mulf %76, %77 : vector<4x256xf32>
    %79 = vector.extract_strided_slice %73 {offsets = [0, 1], sizes = [4, 1], strides = [1, 1]} : vector<4x4xf32> to vector<4x1xf32>
    %80 = vector.extract_strided_slice %71 {offsets = [1, 0], sizes = [1, 256], strides = [1, 1]} : vector<4x256xf32> to vector<1x256xf32>
    %81 = vector.broadcast %79 : vector<4x1xf32> to vector<4x256xf32>
    %82 = vector.broadcast %80 : vector<1x256xf32> to vector<4x256xf32>
    %83 = arith.mulf %81, %82 : vector<4x256xf32>
    %84 = arith.addf %78, %83 : vector<4x256xf32>
    %85 = vector.extract_strided_slice %73 {offsets = [0, 2], sizes = [4, 1], strides = [1, 1]} : vector<4x4xf32> to vector<4x1xf32>
    %86 = vector.extract_strided_slice %71 {offsets = [2, 0], sizes = [1, 256], strides = [1, 1]} : vector<4x256xf32> to vector<1x256xf32>
    %87 = vector.broadcast %85 : vector<4x1xf32> to vector<4x256xf32>
    %88 = vector.broadcast %86 : vector<1x256xf32> to vector<4x256xf32>
    %89 = arith.mulf %87, %88 : vector<4x256xf32>
    %90 = arith.addf %84, %89 : vector<4x256xf32>
    %91 = vector.extract_strided_slice %73 {offsets = [0, 3], sizes = [4, 1], strides = [1, 1]} : vector<4x4xf32> to vector<4x1xf32>
    %92 = vector.extract_strided_slice %71 {offsets = [3, 0], sizes = [1, 256], strides = [1, 1]} : vector<4x256xf32> to vector<1x256xf32>
    %93 = vector.broadcast %91 : vector<4x1xf32> to vector<4x256xf32>
    %94 = vector.broadcast %92 : vector<1x256xf32> to vector<4x256xf32>
    %95 = arith.mulf %93, %94 : vector<4x256xf32>
    %96 = arith.addf %90, %95 : vector<4x256xf32>
    %c2_20 = arith.constant 2 : index
    %c0_21 = arith.constant 0 : index
    %c0_22 = arith.constant 0 : index
    %97 = vector.load %arg5[%c2_20, %c0_21, %c0_22] : memref<9x4x1xf32, #tpu.memory_space<vmem>>, vector<1x4x1xf32>
    %98 = vector.shape_cast %97 : vector<1x4x1xf32> to vector<4x1xf32>
    %99 = vector.broadcast %98 : vector<4x1xf32> to vector<4x256xf32>
    %100 = arith.addf %96, %99 : vector<4x256xf32>
    %cst_23 = arith.constant 0.000000e+00 : f32
    %101 = vector.broadcast %cst_23 : f32 to vector<4x256xf32>
    %102 = arith.maximumf %100, %101 : vector<4x256xf32>
    %c3 = arith.constant 3 : index
    %c0_24 = arith.constant 0 : index
    %c0_25 = arith.constant 0 : index
    %103 = vector.load %arg4[%c3, %c0_24, %c0_25] : memref<9x4x4xf32, #tpu.memory_space<vmem>>, vector<1x4x4xf32>
    %104 = vector.shape_cast %103 : vector<1x4x4xf32> to vector<4x4xf32>
    %105 = vector.extract_strided_slice %104 {offsets = [0, 0], sizes = [4, 1], strides = [1, 1]} : vector<4x4xf32> to vector<4x1xf32>
    %106 = vector.extract_strided_slice %102 {offsets = [0, 0], sizes = [1, 256], strides = [1, 1]} : vector<4x256xf32> to vector<1x256xf32>
    %107 = vector.broadcast %105 : vector<4x1xf32> to vector<4x256xf32>
    %108 = vector.broadcast %106 : vector<1x256xf32> to vector<4x256xf32>
    %109 = arith.mulf %107, %108 : vector<4x256xf32>
    %110 = vector.extract_strided_slice %104 {offsets = [0, 1], sizes = [4, 1], strides = [1, 1]} : vector<4x4xf32> to vector<4x1xf32>
    %111 = vector.extract_strided_slice %102 {offsets = [1, 0], sizes = [1, 256], strides = [1, 1]} : vector<4x256xf32> to vector<1x256xf32>
    %112 = vector.broadcast %110 : vector<4x1xf32> to vector<4x256xf32>
    %113 = vector.broadcast %111 : vector<1x256xf32> to vector<4x256xf32>
    %114 = arith.mulf %112, %113 : vector<4x256xf32>
    %115 = arith.addf %109, %114 : vector<4x256xf32>
    %116 = vector.extract_strided_slice %104 {offsets = [0, 2], sizes = [4, 1], strides = [1, 1]} : vector<4x4xf32> to vector<4x1xf32>
    %117 = vector.extract_strided_slice %102 {offsets = [2, 0], sizes = [1, 256], strides = [1, 1]} : vector<4x256xf32> to vector<1x256xf32>
    %118 = vector.broadcast %116 : vector<4x1xf32> to vector<4x256xf32>
    %119 = vector.broadcast %117 : vector<1x256xf32> to vector<4x256xf32>
    %120 = arith.mulf %118, %119 : vector<4x256xf32>
    %121 = arith.addf %115, %120 : vector<4x256xf32>
    %122 = vector.extract_strided_slice %104 {offsets = [0, 3], sizes = [4, 1], strides = [1, 1]} : vector<4x4xf32> to vector<4x1xf32>
    %123 = vector.extract_strided_slice %102 {offsets = [3, 0], sizes = [1, 256], strides = [1, 1]} : vector<4x256xf32> to vector<1x256xf32>
    %124 = vector.broadcast %122 : vector<4x1xf32> to vector<4x256xf32>
    %125 = vector.broadcast %123 : vector<1x256xf32> to vector<4x256xf32>
    %126 = arith.mulf %124, %125 : vector<4x256xf32>
    %127 = arith.addf %121, %126 : vector<4x256xf32>
    %c3_26 = arith.constant 3 : index
    %c0_27 = arith.constant 0 : index
    %c0_28 = arith.constant 0 : index
    %128 = vector.load %arg5[%c3_26, %c0_27, %c0_28] : memref<9x4x1xf32, #tpu.memory_space<vmem>>, vector<1x4x1xf32>
    %129 = vector.shape_cast %128 : vector<1x4x1xf32> to vector<4x1xf32>
    %130 = vector.broadcast %129 : vector<4x1xf32> to vector<4x256xf32>
    %131 = arith.addf %127, %130 : vector<4x256xf32>
    %cst_29 = arith.constant 0.000000e+00 : f32
    %132 = vector.broadcast %cst_29 : f32 to vector<4x256xf32>
    %133 = arith.maximumf %131, %132 : vector<4x256xf32>
    %c4 = arith.constant 4 : index
    %c0_30 = arith.constant 0 : index
    %c0_31 = arith.constant 0 : index
    %134 = vector.load %arg4[%c4, %c0_30, %c0_31] : memref<9x4x4xf32, #tpu.memory_space<vmem>>, vector<1x4x4xf32>
    %135 = vector.shape_cast %134 : vector<1x4x4xf32> to vector<4x4xf32>
    %136 = vector.extract_strided_slice %135 {offsets = [0, 0], sizes = [4, 1], strides = [1, 1]} : vector<4x4xf32> to vector<4x1xf32>
    %137 = vector.extract_strided_slice %133 {offsets = [0, 0], sizes = [1, 256], strides = [1, 1]} : vector<4x256xf32> to vector<1x256xf32>
    %138 = vector.broadcast %136 : vector<4x1xf32> to vector<4x256xf32>
    %139 = vector.broadcast %137 : vector<1x256xf32> to vector<4x256xf32>
    %140 = arith.mulf %138, %139 : vector<4x256xf32>
    %141 = vector.extract_strided_slice %135 {offsets = [0, 1], sizes = [4, 1], strides = [1, 1]} : vector<4x4xf32> to vector<4x1xf32>
    %142 = vector.extract_strided_slice %133 {offsets = [1, 0], sizes = [1, 256], strides = [1, 1]} : vector<4x256xf32> to vector<1x256xf32>
    %143 = vector.broadcast %141 : vector<4x1xf32> to vector<4x256xf32>
    %144 = vector.broadcast %142 : vector<1x256xf32> to vector<4x256xf32>
    %145 = arith.mulf %143, %144 : vector<4x256xf32>
    %146 = arith.addf %140, %145 : vector<4x256xf32>
    %147 = vector.extract_strided_slice %135 {offsets = [0, 2], sizes = [4, 1], strides = [1, 1]} : vector<4x4xf32> to vector<4x1xf32>
    %148 = vector.extract_strided_slice %133 {offsets = [2, 0], sizes = [1, 256], strides = [1, 1]} : vector<4x256xf32> to vector<1x256xf32>
    %149 = vector.broadcast %147 : vector<4x1xf32> to vector<4x256xf32>
    %150 = vector.broadcast %148 : vector<1x256xf32> to vector<4x256xf32>
    %151 = arith.mulf %149, %150 : vector<4x256xf32>
    %152 = arith.addf %146, %151 : vector<4x256xf32>
    %153 = vector.extract_strided_slice %135 {offsets = [0, 3], sizes = [4, 1], strides = [1, 1]} : vector<4x4xf32> to vector<4x1xf32>
    %154 = vector.extract_strided_slice %133 {offsets = [3, 0], sizes = [1, 256], strides = [1, 1]} : vector<4x256xf32> to vector<1x256xf32>
    %155 = vector.broadcast %153 : vector<4x1xf32> to vector<4x256xf32>
    %156 = vector.broadcast %154 : vector<1x256xf32> to vector<4x256xf32>
    %157 = arith.mulf %155, %156 : vector<4x256xf32>
    %158 = arith.addf %152, %157 : vector<4x256xf32>
    %c4_32 = arith.constant 4 : index
    %c0_33 = arith.constant 0 : index
    %c0_34 = arith.constant 0 : index
    %159 = vector.load %arg5[%c4_32, %c0_33, %c0_34] : memref<9x4x1xf32, #tpu.memory_space<vmem>>, vector<1x4x1xf32>
    %160 = vector.shape_cast %159 : vector<1x4x1xf32> to vector<4x1xf32>
    %161 = vector.broadcast %160 : vector<4x1xf32> to vector<4x256xf32>
    %162 = arith.addf %158, %161 : vector<4x256xf32>
    %cst_35 = arith.constant 0.000000e+00 : f32
    %163 = vector.broadcast %cst_35 : f32 to vector<4x256xf32>
    %164 = arith.maximumf %162, %163 : vector<4x256xf32>
    %c5 = arith.constant 5 : index
    %c0_36 = arith.constant 0 : index
    %c0_37 = arith.constant 0 : index
    %165 = vector.load %arg4[%c5, %c0_36, %c0_37] : memref<9x4x4xf32, #tpu.memory_space<vmem>>, vector<1x4x4xf32>
    %166 = vector.shape_cast %165 : vector<1x4x4xf32> to vector<4x4xf32>
    %167 = vector.extract_strided_slice %166 {offsets = [0, 0], sizes = [4, 1], strides = [1, 1]} : vector<4x4xf32> to vector<4x1xf32>
    %168 = vector.extract_strided_slice %164 {offsets = [0, 0], sizes = [1, 256], strides = [1, 1]} : vector<4x256xf32> to vector<1x256xf32>
    %169 = vector.broadcast %167 : vector<4x1xf32> to vector<4x256xf32>
    %170 = vector.broadcast %168 : vector<1x256xf32> to vector<4x256xf32>
    %171 = arith.mulf %169, %170 : vector<4x256xf32>
    %172 = vector.extract_strided_slice %166 {offsets = [0, 1], sizes = [4, 1], strides = [1, 1]} : vector<4x4xf32> to vector<4x1xf32>
    %173 = vector.extract_strided_slice %164 {offsets = [1, 0], sizes = [1, 256], strides = [1, 1]} : vector<4x256xf32> to vector<1x256xf32>
    %174 = vector.broadcast %172 : vector<4x1xf32> to vector<4x256xf32>
    %175 = vector.broadcast %173 : vector<1x256xf32> to vector<4x256xf32>
    %176 = arith.mulf %174, %175 : vector<4x256xf32>
    %177 = arith.addf %171, %176 : vector<4x256xf32>
    %178 = vector.extract_strided_slice %166 {offsets = [0, 2], sizes = [4, 1], strides = [1, 1]} : vector<4x4xf32> to vector<4x1xf32>
    %179 = vector.extract_strided_slice %164 {offsets = [2, 0], sizes = [1, 256], strides = [1, 1]} : vector<4x256xf32> to vector<1x256xf32>
    %180 = vector.broadcast %178 : vector<4x1xf32> to vector<4x256xf32>
    %181 = vector.broadcast %179 : vector<1x256xf32> to vector<4x256xf32>
    %182 = arith.mulf %180, %181 : vector<4x256xf32>
    %183 = arith.addf %177, %182 : vector<4x256xf32>
    %184 = vector.extract_strided_slice %166 {offsets = [0, 3], sizes = [4, 1], strides = [1, 1]} : vector<4x4xf32> to vector<4x1xf32>
    %185 = vector.extract_strided_slice %164 {offsets = [3, 0], sizes = [1, 256], strides = [1, 1]} : vector<4x256xf32> to vector<1x256xf32>
    %186 = vector.broadcast %184 : vector<4x1xf32> to vector<4x256xf32>
    %187 = vector.broadcast %185 : vector<1x256xf32> to vector<4x256xf32>
    %188 = arith.mulf %186, %187 : vector<4x256xf32>
    %189 = arith.addf %183, %188 : vector<4x256xf32>
    %c5_38 = arith.constant 5 : index
    %c0_39 = arith.constant 0 : index
    %c0_40 = arith.constant 0 : index
    %190 = vector.load %arg5[%c5_38, %c0_39, %c0_40] : memref<9x4x1xf32, #tpu.memory_space<vmem>>, vector<1x4x1xf32>
    %191 = vector.shape_cast %190 : vector<1x4x1xf32> to vector<4x1xf32>
    %192 = vector.broadcast %191 : vector<4x1xf32> to vector<4x256xf32>
    %193 = arith.addf %189, %192 : vector<4x256xf32>
    %cst_41 = arith.constant 0.000000e+00 : f32
    %194 = vector.broadcast %cst_41 : f32 to vector<4x256xf32>
    %195 = arith.maximumf %193, %194 : vector<4x256xf32>
    %c6 = arith.constant 6 : index
    %c0_42 = arith.constant 0 : index
    %c0_43 = arith.constant 0 : index
    %196 = vector.load %arg4[%c6, %c0_42, %c0_43] : memref<9x4x4xf32, #tpu.memory_space<vmem>>, vector<1x4x4xf32>
    %197 = vector.shape_cast %196 : vector<1x4x4xf32> to vector<4x4xf32>
    %198 = vector.extract_strided_slice %197 {offsets = [0, 0], sizes = [4, 1], strides = [1, 1]} : vector<4x4xf32> to vector<4x1xf32>
    %199 = vector.extract_strided_slice %195 {offsets = [0, 0], sizes = [1, 256], strides = [1, 1]} : vector<4x256xf32> to vector<1x256xf32>
    %200 = vector.broadcast %198 : vector<4x1xf32> to vector<4x256xf32>
    %201 = vector.broadcast %199 : vector<1x256xf32> to vector<4x256xf32>
    %202 = arith.mulf %200, %201 : vector<4x256xf32>
    %203 = vector.extract_strided_slice %197 {offsets = [0, 1], sizes = [4, 1], strides = [1, 1]} : vector<4x4xf32> to vector<4x1xf32>
    %204 = vector.extract_strided_slice %195 {offsets = [1, 0], sizes = [1, 256], strides = [1, 1]} : vector<4x256xf32> to vector<1x256xf32>
    %205 = vector.broadcast %203 : vector<4x1xf32> to vector<4x256xf32>
    %206 = vector.broadcast %204 : vector<1x256xf32> to vector<4x256xf32>
    %207 = arith.mulf %205, %206 : vector<4x256xf32>
    %208 = arith.addf %202, %207 : vector<4x256xf32>
    %209 = vector.extract_strided_slice %197 {offsets = [0, 2], sizes = [4, 1], strides = [1, 1]} : vector<4x4xf32> to vector<4x1xf32>
    %210 = vector.extract_strided_slice %195 {offsets = [2, 0], sizes = [1, 256], strides = [1, 1]} : vector<4x256xf32> to vector<1x256xf32>
    %211 = vector.broadcast %209 : vector<4x1xf32> to vector<4x256xf32>
    %212 = vector.broadcast %210 : vector<1x256xf32> to vector<4x256xf32>
    %213 = arith.mulf %211, %212 : vector<4x256xf32>
    %214 = arith.addf %208, %213 : vector<4x256xf32>
    %215 = vector.extract_strided_slice %197 {offsets = [0, 3], sizes = [4, 1], strides = [1, 1]} : vector<4x4xf32> to vector<4x1xf32>
    %216 = vector.extract_strided_slice %195 {offsets = [3, 0], sizes = [1, 256], strides = [1, 1]} : vector<4x256xf32> to vector<1x256xf32>
    %217 = vector.broadcast %215 : vector<4x1xf32> to vector<4x256xf32>
    %218 = vector.broadcast %216 : vector<1x256xf32> to vector<4x256xf32>
    %219 = arith.mulf %217, %218 : vector<4x256xf32>
    %220 = arith.addf %214, %219 : vector<4x256xf32>
    %c6_44 = arith.constant 6 : index
    %c0_45 = arith.constant 0 : index
    %c0_46 = arith.constant 0 : index
    %221 = vector.load %arg5[%c6_44, %c0_45, %c0_46] : memref<9x4x1xf32, #tpu.memory_space<vmem>>, vector<1x4x1xf32>
    %222 = vector.shape_cast %221 : vector<1x4x1xf32> to vector<4x1xf32>
    %223 = vector.broadcast %222 : vector<4x1xf32> to vector<4x256xf32>
    %224 = arith.addf %220, %223 : vector<4x256xf32>
    %cst_47 = arith.constant 0.000000e+00 : f32
    %225 = vector.broadcast %cst_47 : f32 to vector<4x256xf32>
    %226 = arith.maximumf %224, %225 : vector<4x256xf32>
    %c7 = arith.constant 7 : index
    %c0_48 = arith.constant 0 : index
    %c0_49 = arith.constant 0 : index
    %227 = vector.load %arg4[%c7, %c0_48, %c0_49] : memref<9x4x4xf32, #tpu.memory_space<vmem>>, vector<1x4x4xf32>
    %228 = vector.shape_cast %227 : vector<1x4x4xf32> to vector<4x4xf32>
    %229 = vector.extract_strided_slice %228 {offsets = [0, 0], sizes = [4, 1], strides = [1, 1]} : vector<4x4xf32> to vector<4x1xf32>
    %230 = vector.extract_strided_slice %226 {offsets = [0, 0], sizes = [1, 256], strides = [1, 1]} : vector<4x256xf32> to vector<1x256xf32>
    %231 = vector.broadcast %229 : vector<4x1xf32> to vector<4x256xf32>
    %232 = vector.broadcast %230 : vector<1x256xf32> to vector<4x256xf32>
    %233 = arith.mulf %231, %232 : vector<4x256xf32>
    %234 = vector.extract_strided_slice %228 {offsets = [0, 1], sizes = [4, 1], strides = [1, 1]} : vector<4x4xf32> to vector<4x1xf32>
    %235 = vector.extract_strided_slice %226 {offsets = [1, 0], sizes = [1, 256], strides = [1, 1]} : vector<4x256xf32> to vector<1x256xf32>
    %236 = vector.broadcast %234 : vector<4x1xf32> to vector<4x256xf32>
    %237 = vector.broadcast %235 : vector<1x256xf32> to vector<4x256xf32>
    %238 = arith.mulf %236, %237 : vector<4x256xf32>
    %239 = arith.addf %233, %238 : vector<4x256xf32>
    %240 = vector.extract_strided_slice %228 {offsets = [0, 2], sizes = [4, 1], strides = [1, 1]} : vector<4x4xf32> to vector<4x1xf32>
    %241 = vector.extract_strided_slice %226 {offsets = [2, 0], sizes = [1, 256], strides = [1, 1]} : vector<4x256xf32> to vector<1x256xf32>
    %242 = vector.broadcast %240 : vector<4x1xf32> to vector<4x256xf32>
    %243 = vector.broadcast %241 : vector<1x256xf32> to vector<4x256xf32>
    %244 = arith.mulf %242, %243 : vector<4x256xf32>
    %245 = arith.addf %239, %244 : vector<4x256xf32>
    %246 = vector.extract_strided_slice %228 {offsets = [0, 3], sizes = [4, 1], strides = [1, 1]} : vector<4x4xf32> to vector<4x1xf32>
    %247 = vector.extract_strided_slice %226 {offsets = [3, 0], sizes = [1, 256], strides = [1, 1]} : vector<4x256xf32> to vector<1x256xf32>
    %248 = vector.broadcast %246 : vector<4x1xf32> to vector<4x256xf32>
    %249 = vector.broadcast %247 : vector<1x256xf32> to vector<4x256xf32>
    %250 = arith.mulf %248, %249 : vector<4x256xf32>
    %251 = arith.addf %245, %250 : vector<4x256xf32>
    %c7_50 = arith.constant 7 : index
    %c0_51 = arith.constant 0 : index
    %c0_52 = arith.constant 0 : index
    %252 = vector.load %arg5[%c7_50, %c0_51, %c0_52] : memref<9x4x1xf32, #tpu.memory_space<vmem>>, vector<1x4x1xf32>
    %253 = vector.shape_cast %252 : vector<1x4x1xf32> to vector<4x1xf32>
    %254 = vector.broadcast %253 : vector<4x1xf32> to vector<4x256xf32>
    %255 = arith.addf %251, %254 : vector<4x256xf32>
    %cst_53 = arith.constant 0.000000e+00 : f32
    %256 = vector.broadcast %cst_53 : f32 to vector<4x256xf32>
    %257 = arith.maximumf %255, %256 : vector<4x256xf32>
    %c8 = arith.constant 8 : index
    %c0_54 = arith.constant 0 : index
    %c0_55 = arith.constant 0 : index
    %258 = vector.load %arg4[%c8, %c0_54, %c0_55] : memref<9x4x4xf32, #tpu.memory_space<vmem>>, vector<1x4x4xf32>
    %259 = vector.shape_cast %258 : vector<1x4x4xf32> to vector<4x4xf32>
    %260 = vector.extract_strided_slice %259 {offsets = [0, 0], sizes = [4, 1], strides = [1, 1]} : vector<4x4xf32> to vector<4x1xf32>
    %261 = vector.extract_strided_slice %257 {offsets = [0, 0], sizes = [1, 256], strides = [1, 1]} : vector<4x256xf32> to vector<1x256xf32>
    %262 = vector.broadcast %260 : vector<4x1xf32> to vector<4x256xf32>
    %263 = vector.broadcast %261 : vector<1x256xf32> to vector<4x256xf32>
    %264 = arith.mulf %262, %263 : vector<4x256xf32>
    %265 = vector.extract_strided_slice %259 {offsets = [0, 1], sizes = [4, 1], strides = [1, 1]} : vector<4x4xf32> to vector<4x1xf32>
    %266 = vector.extract_strided_slice %257 {offsets = [1, 0], sizes = [1, 256], strides = [1, 1]} : vector<4x256xf32> to vector<1x256xf32>
    %267 = vector.broadcast %265 : vector<4x1xf32> to vector<4x256xf32>
    %268 = vector.broadcast %266 : vector<1x256xf32> to vector<4x256xf32>
    %269 = arith.mulf %267, %268 : vector<4x256xf32>
    %270 = arith.addf %264, %269 : vector<4x256xf32>
    %271 = vector.extract_strided_slice %259 {offsets = [0, 2], sizes = [4, 1], strides = [1, 1]} : vector<4x4xf32> to vector<4x1xf32>
    %272 = vector.extract_strided_slice %257 {offsets = [2, 0], sizes = [1, 256], strides = [1, 1]} : vector<4x256xf32> to vector<1x256xf32>
    %273 = vector.broadcast %271 : vector<4x1xf32> to vector<4x256xf32>
    %274 = vector.broadcast %272 : vector<1x256xf32> to vector<4x256xf32>
    %275 = arith.mulf %273, %274 : vector<4x256xf32>
    %276 = arith.addf %270, %275 : vector<4x256xf32>
    %277 = vector.extract_strided_slice %259 {offsets = [0, 3], sizes = [4, 1], strides = [1, 1]} : vector<4x4xf32> to vector<4x1xf32>
    %278 = vector.extract_strided_slice %257 {offsets = [3, 0], sizes = [1, 256], strides = [1, 1]} : vector<4x256xf32> to vector<1x256xf32>
    %279 = vector.broadcast %277 : vector<4x1xf32> to vector<4x256xf32>
    %280 = vector.broadcast %278 : vector<1x256xf32> to vector<4x256xf32>
    %281 = arith.mulf %279, %280 : vector<4x256xf32>
    %282 = arith.addf %276, %281 : vector<4x256xf32>
    %c8_56 = arith.constant 8 : index
    %c0_57 = arith.constant 0 : index
    %c0_58 = arith.constant 0 : index
    %283 = vector.load %arg5[%c8_56, %c0_57, %c0_58] : memref<9x4x1xf32, #tpu.memory_space<vmem>>, vector<1x4x1xf32>
    %284 = vector.shape_cast %283 : vector<1x4x1xf32> to vector<4x1xf32>
    %285 = vector.broadcast %284 : vector<4x1xf32> to vector<4x256xf32>
    %286 = arith.addf %282, %285 : vector<4x256xf32>
    %cst_59 = arith.constant 0.000000e+00 : f32
    %287 = vector.broadcast %cst_59 : f32 to vector<4x256xf32>
    %288 = arith.maximumf %286, %287 : vector<4x256xf32>
    %c0_60 = arith.constant 0 : index
    %c0_61 = arith.constant 0 : index
    %289 = vector.load %arg6[%c0_60, %c0_61] : memref<1x4xf32, #tpu.memory_space<vmem>>, vector<1x4xf32>
    %290 = vector.extract_strided_slice %289 {offsets = [0, 0], sizes = [1, 1], strides = [1, 1]} : vector<1x4xf32> to vector<1x1xf32>
    %291 = vector.extract_strided_slice %288 {offsets = [0, 0], sizes = [1, 256], strides = [1, 1]} : vector<4x256xf32> to vector<1x256xf32>
    %292 = vector.broadcast %290 : vector<1x1xf32> to vector<1x256xf32>
    %293 = arith.mulf %292, %291 : vector<1x256xf32>
    %294 = vector.extract_strided_slice %289 {offsets = [0, 1], sizes = [1, 1], strides = [1, 1]} : vector<1x4xf32> to vector<1x1xf32>
    %295 = vector.extract_strided_slice %288 {offsets = [1, 0], sizes = [1, 256], strides = [1, 1]} : vector<4x256xf32> to vector<1x256xf32>
    %296 = vector.broadcast %294 : vector<1x1xf32> to vector<1x256xf32>
    %297 = arith.mulf %296, %295 : vector<1x256xf32>
    %298 = arith.addf %293, %297 : vector<1x256xf32>
    %299 = vector.extract_strided_slice %289 {offsets = [0, 2], sizes = [1, 1], strides = [1, 1]} : vector<1x4xf32> to vector<1x1xf32>
    %300 = vector.extract_strided_slice %288 {offsets = [2, 0], sizes = [1, 256], strides = [1, 1]} : vector<4x256xf32> to vector<1x256xf32>
    %301 = vector.broadcast %299 : vector<1x1xf32> to vector<1x256xf32>
    %302 = arith.mulf %301, %300 : vector<1x256xf32>
    %303 = arith.addf %298, %302 : vector<1x256xf32>
    %304 = vector.extract_strided_slice %289 {offsets = [0, 3], sizes = [1, 1], strides = [1, 1]} : vector<1x4xf32> to vector<1x1xf32>
    %305 = vector.extract_strided_slice %288 {offsets = [3, 0], sizes = [1, 256], strides = [1, 1]} : vector<4x256xf32> to vector<1x256xf32>
    %306 = vector.broadcast %304 : vector<1x1xf32> to vector<1x256xf32>
    %307 = arith.mulf %306, %305 : vector<1x256xf32>
    %308 = arith.addf %303, %307 : vector<1x256xf32>
    %c0_62 = arith.constant 0 : index
    %c0_63 = arith.constant 0 : index
    %309 = vector.load %arg7[%c0_62, %c0_63] : memref<1x1xf32, #tpu.memory_space<vmem>>, vector<1x1xf32>
    %310 = vector.broadcast %309 : vector<1x1xf32> to vector<1x256xf32>
    %311 = arith.addf %308, %310 : vector<1x256xf32>
    %c0_64 = arith.constant 0 : index
    %c0_65 = arith.constant 0 : index
    %312 = vector.load %arg8[%c0_64, %c0_65] : memref<1x256xf32, #tpu.memory_space<vmem>>, vector<1x256xf32>
    tpu.vector_store %arg8[%c0_64, %c0_65], %311 {strides = array<i32>} : memref<1x256xf32, #tpu.memory_space<vmem>>, vector<1x256xf32>,
    return
  }
  func.func @transform_0(%arg0: i32) -> (i32, i32) {
    %c0_i32 = arith.constant 0 : i32
    %c0_i32_0 = arith.constant 0 : i32
    return %c0_i32, %arg0 : i32, i32
  }
  func.func @transform_1(%arg0: i32) -> (i32, i32) {
    %c0_i32 = arith.constant 0 : i32
    %c0_i32_0 = arith.constant 0 : i32
    %c0_i32_1 = arith.constant 0 : i32
    return %c0_i32, %c0_i32_0 : i32, i32
  }
  func.func @transform_2(%arg0: i32) -> (i32, i32) {
    %c0_i32 = arith.constant 0 : i32
    %c0_i32_0 = arith.constant 0 : i32
    %c0_i32_1 = arith.constant 0 : i32
    return %c0_i32, %c0_i32_0 : i32, i32
  }
  func.func @transform_3(%arg0: i32) -> (i32, i32, i32) {
    %c0_i32 = arith.constant 0 : i32
    %c0_i32_0 = arith.constant 0 : i32
    %c0_i32_1 = arith.constant 0 : i32
    %c0_i32_2 = arith.constant 0 : i32
    return %c0_i32, %c0_i32_0, %c0_i32_1 : i32, i32, i32
  }
  func.func @transform_4(%arg0: i32) -> (i32, i32, i32) {
    %c0_i32 = arith.constant 0 : i32
    %c0_i32_0 = arith.constant 0 : i32
    %c0_i32_1 = arith.constant 0 : i32
    %c0_i32_2 = arith.constant 0 : i32
    return %c0_i32, %c0_i32_0, %c0_i32_1 : i32, i32, i32
  }
  func.func @transform_5(%arg0: i32) -> (i32, i32) {
    %c0_i32 = arith.constant 0 : i32
    %c0_i32_0 = arith.constant 0 : i32
    %c0_i32_1 = arith.constant 0 : i32
    return %c0_i32, %c0_i32_0 : i32, i32
  }
  func.func @transform_6(%arg0: i32) -> (i32, i32) {
    %c0_i32 = arith.constant 0 : i32
    %c0_i32_0 = arith.constant 0 : i32
    %c0_i32_1 = arith.constant 0 : i32
    return %c0_i32, %c0_i32_0 : i32, i32
  }
  func.func @transform_7(%arg0: i32) -> (i32, i32) {
    %c0_i32 = arith.constant 0 : i32
    %c0_i32_0 = arith.constant 0 : i32
    return %c0_i32, %arg0 : i32, i32
  }
}

</mosaic_0001>

<bundles_post_ra>
// kernel: tpu_custom_call.1
= control target key start
LH: loop header
LB: loop body
LE: loop exit
PB: predicated region body
PF: predicated region fallthrough
CT: control target
= control target key end

     0   :  { %s1235_s0 = inlined_call_operand.vmem [shape: f32[1,256], index: 0, kind: input, shape index: {}]   ;;  %s1236_s1 = inlined_call_operand.vmem [shape: f32[4,1], index: 1, kind: input, shape index: {}]   ;;  %s1237_s2 = inlined_call_operand.vmem [shape: f32[4,1], index: 2, kind: input, shape index: {}]   ;;  %s1238_s3 = inlined_call_operand.vmem [shape: f32[9,4,4], index: 3, kind: input, shape index: {}]   ;;  %s1239_s4 = inlined_call_operand.vmem [shape: f32[9,4,1], index: 4, kind: input, shape index: {}]   ;;  %s1240_s5 = inlined_call_operand.vmem [shape: f32[1,4], index: 5, kind: input, shape index: {}]   ;;  %s1241_s6 = inlined_call_operand.<no memory space> [shape: f32[1,1], index: 6, kind: input, shape index: {}]   ;;  %s1242_s7 = inlined_call_operand.hbm [shape: f32[1,256], index: 7, kind: output, shape index: {}]  }
   0x1   :  { %v12_v0 = vstv %s1241_s6 }
   0x2   :  { %13 = vst [vmem:[#allocation2] sm:$0x1] %v12_v0 }
   0x3   :  { %v59_v1 = vld [vmem:[%s1238_s3] sm:$0xf]  ;;  %v951_v3 = vmov 0   ;;  %v952_v5 = vmov 1  }
   0x4   :  { %v29_v2 = vld [vmem:[%s1236_s1] sm:$0xf]  ;;  %879 = vset.pattern.permute.xlu1 %v951_v3  ;;  %878 = vset.pattern.permute.xlu0 %v951_v3 }
   0x5   :  { %62 = vperm.xlu1 %879, %v59_v1   ;;  %33 = vperm.xlu0 %878, %v29_v2   ;;  %v49_v4 = vld [vmem:[%s1237_s2] sm:$0xf] }
   0x9   :  { %880 = vset.pattern.permute.xlu1 %v952_v5  ;;  %52 = vperm.xlu0 %878, %v49_v4  }
   0xa   :  { %76 = vperm.xlu1 %880, %v59_v1  }
   0xb   :  { %14 = vsyncpa [#allocation4], 0  ;;  %v953_v6 = vmov 2   ;;  %v954_v7 = vmov 3   ;;  %v856_v8 = vld [vmem:[%s1238_s3 + $0x4] sm:$0xf]  ;;  %v37_v25 = vlaneseq }
   0xc   :  { %v123_v9 = vld [vmem:[%s1239_s4] sm:$0xf]  ;;  %v858_v10 = vld [vmem:[%s1238_s3 + $0x8] sm:$0xf]  ;;  %v857_v12 = vld [vmem:[%s1239_s4 + $0x4] sm:$0xf] }
   0xd   :  { %881 = vset.pattern.permute.xlu0 %v953_v6  ;;  %v859_v11 = vld [vmem:[%s1239_s4 + $0x8] sm:$0xf]  ;;  %v860_v13 = vld [vmem:[%s1238_s3 + $0xc] sm:$0xf]  ;;  %v862_v14 = vld [vmem:[%s1238_s3 + $0x10] sm:$0xf] }
   0xe   :  { %882 = vset.pattern.permute.xlu1 %v954_v7  ;;  %92 = vperm.xlu0 %881, %v59_v1   ;;  %v864_v15 = vld [vmem:[%s1238_s3 + $0x14] sm:$0xf]  ;;  %v866_v17 = vld [vmem:[%s1238_s3 + $0x18] sm:$0xf]  ;;  %v861_v18 = vld [vmem:[%s1239_s4 + $0xc] sm:$0xf] }
   0xf   :  { %108 = vperm.xlu1 %882, %v59_v1   ;;  %v865_v16 = vld [vmem:[%s1239_s4 + $0x14] sm:$0xf]  ;;  %v868_v19 = vld [vmem:[%s1238_s3 + $0x1c] sm:$0xf]  ;;  %v1077_v20 = vld [vmem:[%s1238_s3 + $0x20] sm:$0xf] }
  0x10   :  { %v863_v21 = vld [vmem:[%s1239_s4 + $0x10] sm:$0xf]  ;;  %v871_v22 = vld [vmem:[%s1239_s4 + $0x20] sm:$0xf]  ;;  %v867_v24 = vld [vmem:[%s1239_s4 + $0x18] sm:$0xf] }
  0x11   :  { %v1092_v23 = vld [vmem:[%s1240_s5] sm:$0x1]  ;;  %v1107_v26 = vshrl.u32 %v37_v25, 7  ;;  %v869_v32 = vld [vmem:[%s1239_s4 + $0x1c] sm:$0xf]  ;;  %vm839_vm0 = vcmp.lt.s32.totalorder %v37_v25, 256 }
  0x12   :  { %884 = vset.pattern.permute.xlu0 %v951_v3  ;;  %v30_v29 = vld [vmem:[%s1235_s0] sm:$0x3]  ;;  %s956_s0 = smov [#allocation3]  }
  0x13   :  { %883 = vset.pattern.permute.xlu1 %v951_v3  ;;  %137 = vperm.xlu0 %884, %v856_v8   ;;  %v1111_v27 = vsub.s32 0, %v1107_v26  ;;  %v1114_v28 = vsub.s32 1, %v1107_v26  ;;  %v1128_v41 = vsub.s32 3, %v1107_v26  ;;  %v1131_v42 = vsub.s32 2, %v1107_v26  ;;  %s848_s4 = sshll.u32 %s956_s0, 4  ;;  %s849_s4 = int_to_ptr.vmem [resolvable:$true] %s848_s4 }
  0x14   :  { %126 = vperm.xlu1 %883, %v123_v9   ;;  %s927_s16 = scalar_lea.vmem %s849_s4, 32  ;;  %p932_p1 = scmp.lt.s32.totalorder %s849_s4, %s849_s4 }
  0x15   :  { %v40_v30 = vrot.slane %v30_v29, %v1111_v27  ;;  %v44_v31 = vrot.slane %v30_v29, %v1114_v28  ;;  %p928_p0 = scmp.ne.s32.totalorder %s849_s4, %s927_s16  ;;  %p933_p2 = scmp.lt.s32.totalorder %s927_s16, %s927_s16 }
  0x17   :  { %887 = vset.pattern.permute.xlu0 %v954_v7  ;;  %p934_p3 = por %p933_p2, %p932_p1 }
  0x18   :  { %885 = vset.pattern.permute.xlu1 %v952_v5  ;;  %183 = vperm.xlu0 %887, %v856_v8  }
  0x19   :  { %151 = vperm.xlu1 %885, %v856_v8   ;;  %p935_p4 = pnand %p934_p3, %p928_p0 }
  0x1c   :  { %889 = vset.pattern.permute.xlu0 %v952_v5 }
  0x1d   :  { %886 = vset.pattern.permute.xlu1 %v953_v6  ;;  %227 = vperm.xlu0 %889, %v858_v10  }
  0x1e   :  { %167 = vperm.xlu1 %886, %v856_v8  }
  0x21   :  { %892 = vset.pattern.permute.xlu0 %v951_v3 }
  0x22   :  { %888 = vset.pattern.permute.xlu1 %v951_v3  ;;  %278 = vperm.xlu0 %892, %v859_v11  }
  0x23   :  { %202 = vperm.xlu1 %888, %v857_v12  }
  0x26   :  { %895 = vset.pattern.permute.xlu0 %v953_v6 }
  0x27   :  { %213 = vperm.xlu1 %888, %v858_v10   ;;  %319 = vperm.xlu0 %895, %v860_v13  }
  0x2b   :  { %890 = vset.pattern.permute.xlu1 %v953_v6  ;;  %898 = vset.pattern.permute.xlu0 %v951_v3 }
  0x2c   :  { %243 = vperm.xlu1 %890, %v858_v10   ;;  %365 = vperm.xlu0 %898, %v862_v14  }
  0x30   :  { %891 = vset.pattern.permute.xlu1 %v954_v7  ;;  %901 = vset.pattern.permute.xlu0 %v954_v7 }
  0x31   :  { %259 = vperm.xlu1 %891, %v858_v10   ;;  %411 = vperm.xlu0 %901, %v862_v14  }
  0x35   :  { %893 = vset.pattern.permute.xlu1 %v951_v3  ;;  %903 = vset.pattern.permute.xlu0 %v952_v5 }
  0x36   :  { %289 = vperm.xlu1 %893, %v860_v13   ;;  %455 = vperm.xlu0 %903, %v864_v15  }
  0x3a   :  { %894 = vset.pattern.permute.xlu1 %v952_v5  ;;  %906 = vset.pattern.permute.xlu0 %v951_v3 }
  0x3b   :  { %303 = vperm.xlu1 %894, %v860_v13   ;;  %506 = vperm.xlu0 %906, %v865_v16  }
  0x3f   :  { %896 = vset.pattern.permute.xlu1 %v954_v7  ;;  %909 = vset.pattern.permute.xlu0 %v953_v6 }
  0x40   :  { %335 = vperm.xlu1 %896, %v860_v13   ;;  %547 = vperm.xlu0 %909, %v866_v17  }
  0x44   :  { %897 = vset.pattern.permute.xlu1 %v951_v3  ;;  %912 = vset.pattern.permute.xlu0 %v951_v3 }
  0x45   :  { %354 = vperm.xlu1 %897, %v861_v18   ;;  %593 = vperm.xlu0 %912, %v868_v19  }
  0x49   :  { %899 = vset.pattern.permute.xlu1 %v952_v5  ;;  %915 = vset.pattern.permute.xlu0 %v954_v7 }
  0x4a   :  { %379 = vperm.xlu1 %899, %v862_v14   ;;  %639 = vperm.xlu0 %915, %v868_v19  }
  0x4e   :  { %900 = vset.pattern.permute.xlu1 %v953_v6  ;;  %917 = vset.pattern.permute.xlu0 %v952_v5 }
  0x4f   :  { %395 = vperm.xlu1 %900, %v862_v14   ;;  %683 = vperm.xlu0 %917, %v1077_v20  }
  0x53   :  { %902 = vset.pattern.permute.xlu1 %v951_v3  ;;  %920 = vset.pattern.permute.xlu0 %v951_v3 }
  0x54   :  { %430 = vperm.xlu1 %902, %v863_v21   ;;  %734 = vperm.xlu0 %920, %v871_v22  }
  0x58   :  { %441 = vperm.xlu1 %902, %v864_v15   ;;  %923 = vset.pattern.permute.xlu0 %v953_v6 }
  0x59   :  { %772 = vperm.xlu0 %923, %v1092_v23  }
  0x5c   :  { %904 = vset.pattern.permute.xlu1 %v953_v6 }
  0x5d   :  { %471 = vperm.xlu1 %904, %v864_v15   ;;  %926 = vset.pattern.permute.xlu0 %v951_v3 }
  0x61   :  { %905 = vset.pattern.permute.xlu1 %v954_v7 }
  0x62   :  { %487 = vperm.xlu1 %905, %v864_v15  }
  0x66   :  { %907 = vset.pattern.permute.xlu1 %v951_v3 }
  0x67   :  { %517 = vperm.xlu1 %907, %v866_v17  }
  0x6b   :  { %908 = vset.pattern.permute.xlu1 %v952_v5 }
  0x6c   :  { %531 = vperm.xlu1 %908, %v866_v17  }
  0x70   :  { %910 = vset.pattern.permute.xlu1 %v954_v7 }
  0x71   :  { %563 = vperm.xlu1 %910, %v866_v17  }
  0x75   :  { %911 = vset.pattern.permute.xlu1 %v951_v3 }
  0x76   :  { %582 = vperm.xlu1 %911, %v867_v24  }
  0x7a   :  { %913 = vset.pattern.permute.xlu1 %v952_v5 }
  0x7b   :  { %607 = vperm.xlu1 %913, %v868_v19  }
  0x7f   :  { %914 = vset.pattern.permute.xlu1 %v953_v6 }
  0x80   :  { %623 = vperm.xlu1 %914, %v868_v19  }
  0x84   :  { %916 = vset.pattern.permute.xlu1 %v951_v3  ;;  %v63_v33 = vpop.permute.xlu1 %62  ;;  %v34_v34 = vpop.permute.xlu0 %33 }
  0x85   :  { %v47_v35 = vmul.f32 %v40_v30, %v34_v34  ;;  %v48_v36 = vmul.f32 %v44_v31, %v34_v34  ;;  %658 = vperm.xlu1 %916, %v869_v32  }
  0x88   :  { %v53_v37 = vpop.permute.xlu0 %52 }
  0x89   :  { %v55_v38 = vadd.f32 %v53_v37, %v47_v35  ;;  %v56_v39 = vadd.f32 %v53_v37, %v48_v36  ;;  %669 = vperm.xlu1 %916, %v1077_v20   ;;  %v77_v40 = vpop.permute.xlu1 %76 }
  0x8b   :  { %v57_v43 = vmax.f32 %v55_v38, 0.0  ;;  %v58_v44 = vmax.f32 %v56_v39, 0.0 }
  0x8d   :  { %v68_v45 = vrot.slane %v57_v43, %v1111_v27  ;;  %v72_v46 = vrot.slane %v58_v44, %v1111_v27  ;;  %v82_v47 = vrot.slane %v57_v43, %v1114_v28  ;;  %v86_v48 = vrot.slane %v58_v44, %v1114_v28  ;;  %918 = vset.pattern.permute.xlu1 %v953_v6  ;;  %v93_v49 = vpop.permute.xlu0 %92 }
  0x8e   :  { %699 = vperm.xlu1 %918, %v1077_v20   ;;  %v109_v50 = vpop.permute.xlu1 %108  ;;  %v114_v51 = vrot.slane %v57_v43, %v1128_v41  ;;  %v118_v52 = vrot.slane %v58_v44, %v1128_v41  ;;  %v98_v53 = vrot.slane %v57_v43, %v1131_v42  ;;  %v102_v54 = vrot.slane %v58_v44, %v1131_v42 }
  0x8f   :  { %v73_v55 = vmul.f32 %v68_v45, %v63_v33  ;;  %v74_v56 = vmul.f32 %v72_v46, %v63_v33  ;;  %v87_v57 = vmul.f32 %v82_v47, %v77_v40  ;;  %v88_v58 = vmul.f32 %v86_v48, %v77_v40  ;;  %v807_v46 = vld [vmem:[#allocation2] sm:$0x1] }
  0x90   :  { %v103_v59 = vmul.f32 %v98_v53, %v93_v49  ;;  %v104_v60 = vmul.f32 %v102_v54, %v93_v49  ;;  %v119_v63 = vmul.f32 %v114_v51, %v109_v50  ;;  %v120_v0 = vmul.f32 %v118_v52, %v109_v50 }
  0x91   :  { %v89_v61 = vadd.f32 %v87_v57, %v73_v55  ;;  %v90_v62 = vadd.f32 %v88_v58, %v74_v56 }
  0x92   :  { %919 = vset.pattern.permute.xlu1 %v954_v7  ;;  %v138_v12 = vpop.permute.xlu0 %137 }
  0x93   :  { %v105_v1 = vadd.f32 %v103_v59, %v89_v61  ;;  %v106_v2 = vadd.f32 %v104_v60, %v90_v62  ;;  %715 = vperm.xlu1 %919, %v1077_v20   ;;  %v127_v4 = vpop.permute.xlu1 %126 }
  0x95   :  { %v121_v6 = vadd.f32 %v119_v63, %v105_v1  ;;  %v122_v8 = vadd.f32 %v120_v0, %v106_v2 }
  0x97   :  { %v129_v9 = vadd.f32 %v127_v4, %v121_v6  ;;  %v130_v10 = vadd.f32 %v127_v4, %v122_v8  ;;  %921 = vset.pattern.permute.xlu1 %v952_v5  ;;  %v184_v32 = vpop.permute.xlu0 %183 }
  0x98   :  { %754 = vperm.xlu1 %921, %v1092_v23   ;;  %v152_v11 = vpop.permute.xlu1 %151 }
  0x99   :  { %v131_v13 = vmax.f32 %v129_v9, 0.0  ;;  %v132_v14 = vmax.f32 %v130_v10, 0.0 }
  0x9b   :  { %v157_v15 = vrot.slane %v131_v13, %v1114_v28  ;;  %v161_v16 = vrot.slane %v132_v14, %v1114_v28  ;;  %v143_v17 = vrot.slane %v131_v13, %v1111_v27  ;;  %v147_v18 = vrot.slane %v132_v14, %v1111_v27 }
  0x9c   :  { %922 = vset.pattern.permute.xlu1 %v951_v3  ;;  %v189_v19 = vrot.slane %v131_v13, %v1128_v41  ;;  %v193_v5 = vrot.slane %v132_v14, %v1128_v41  ;;  %v173_v20 = vrot.slane %v131_v13, %v1131_v42  ;;  %v177_v21 = vrot.slane %v132_v14, %v1131_v42  ;;  %v228_v52 = vpop.permute.xlu0 %227 }
  0x9d   :  { %v162_v22 = vmul.f32 %v157_v15, %v152_v11  ;;  %v163_v24 = vmul.f32 %v161_v16, %v152_v11  ;;  %v148_v29 = vmul.f32 %v143_v17, %v138_v12  ;;  %v149_v30 = vmul.f32 %v147_v18, %v138_v12  ;;  %744 = vperm.xlu1 %922, %v1092_v23   ;;  %v168_v31 = vpop.permute.xlu1 %167 }
  0x9e   :  { %v178_v33 = vmul.f32 %v173_v20, %v168_v31  ;;  %v179_v34 = vmul.f32 %v177_v21, %v168_v31  ;;  %v194_v37 = vmul.f32 %v189_v19, %v184_v32  ;;  %v195_v38 = vmul.f32 %v193_v5, %v184_v32 }
  0x9f   :  { %v164_v35 = vadd.f32 %v162_v22, %v148_v29  ;;  %v165_v36 = vadd.f32 %v163_v24, %v149_v30 }
  0xa1   :  { %v180_v39 = vadd.f32 %v178_v33, %v164_v35  ;;  %v181_v40 = vadd.f32 %v179_v34, %v165_v36  ;;  %924 = vset.pattern.permute.xlu1 %v954_v7  ;;  %v279_v11 = vpop.permute.xlu0 %278 }
  0xa2   :  { %790 = vperm.xlu1 %924, %v1092_v23   ;;  %v203_v43 = vpop.permute.xlu1 %202 }
  0xa3   :  { %v196_v44 = vadd.f32 %v194_v37, %v180_v39  ;;  %v197_v45 = vadd.f32 %v195_v38, %v181_v40 }
  0xa5   :  { %v205_v47 = vadd.f32 %v203_v43, %v196_v44  ;;  %v206_v48 = vadd.f32 %v203_v43, %v197_v45 }
  0xa6   :  { %v214_v49 = vpop.permute.xlu1 %213  ;;  %925 = vset.pattern.permute.xlu1 %v951_v3  ;;  %v320_v30 = vpop.permute.xlu0 %319 }
  0xa7   :  { %v207_v50 = vmax.f32 %v205_v47, 0.0  ;;  %v208_v51 = vmax.f32 %v206_v48, 0.0  ;;  %810 = vperm.xlu1 %925, %v807_v46  }
  0xa9   :  { %v219_v53 = vrot.slane %v207_v50, %v1111_v27  ;;  %v223_v54 = vrot.slane %v208_v51, %v1111_v27  ;;  %v233_v7 = vrot.slane %v207_v50, %v1114_v28  ;;  %v237_v23 = vrot.slane %v208_v51, %v1114_v28 }
  0xaa   :  { %v249_v55 = vrot.slane %v207_v50, %v1131_v42  ;;  %v253_v56 = vrot.slane %v208_v51, %v1131_v42  ;;  %v265_v1 = vrot.slane %v207_v50, %v1128_v41  ;;  %v269_v2 = vrot.slane %v208_v51, %v1128_v41 }
  0xab   :  { %v224_v57 = vmul.f32 %v219_v53, %v214_v49  ;;  %v225_v58 = vmul.f32 %v223_v54, %v214_v49  ;;  %v238_v59 = vmul.f32 %v233_v7, %v228_v52  ;;  %v239_v3 = vmul.f32 %v237_v23, %v228_v52  ;;  %v244_v60 = vpop.permute.xlu1 %243  ;;  %v366_v7 = vpop.permute.xlu0 %365 }
  0xac   :  { %v254_v63 = vmul.f32 %v249_v55, %v244_v60  ;;  %v255_v0 = vmul.f32 %v253_v56, %v244_v60 }
  0xad   :  { %v240_v61 = vadd.f32 %v238_v59, %v224_v57  ;;  %v241_v62 = vadd.f32 %v239_v3, %v225_v58 }
  0xaf   :  { %v256_v6 = vadd.f32 %v254_v63, %v240_v61  ;;  %v257_v8 = vadd.f32 %v255_v0, %v241_v62 }
  0xb0   :  { %v260_v4 = vpop.permute.xlu1 %259 }
  0xb1   :  { %v270_v9 = vmul.f32 %v265_v1, %v260_v4  ;;  %v271_v10 = vmul.f32 %v269_v2, %v260_v4  ;;  %v412_v2 = vpop.permute.xlu0 %411 }
  0xb3   :  { %v272_v12 = vadd.f32 %v270_v9, %v256_v6  ;;  %v273_v13 = vadd.f32 %v271_v10, %v257_v8 }
  0xb5   :  { %v281_v14 = vadd.f32 %v279_v11, %v272_v12  ;;  %v282_v15 = vadd.f32 %v279_v11, %v273_v13  ;;  %v290_v16 = vpop.permute.xlu1 %289 }
  0xb7   :  { %v283_v17 = vmax.f32 %v281_v14, 0.0  ;;  %v284_v18 = vmax.f32 %v282_v15, 0.0 }
  0xb9   :  { %v295_v19 = vrot.slane %v283_v17, %v1111_v27  ;;  %v299_v5 = vrot.slane %v284_v18, %v1111_v27  ;;  %v309_v20 = vrot.slane %v283_v17, %v1114_v28  ;;  %v313_v21 = vrot.slane %v284_v18, %v1114_v28 }
  0xba   :  { %v304_v22 = vpop.permute.xlu1 %303  ;;  %v325_v24 = vrot.slane %v283_v17, %v1131_v42  ;;  %v329_v29 = vrot.slane %v284_v18, %v1131_v42  ;;  %v341_v39 = vrot.slane %v283_v17, %v1128_v41  ;;  %v345_v40 = vrot.slane %v284_v18, %v1128_v41 }
  0xbb   :  { %v300_v31 = vmul.f32 %v295_v19, %v290_v16  ;;  %v301_v32 = vmul.f32 %v299_v5, %v290_v16  ;;  %v314_v33 = vmul.f32 %v309_v20, %v304_v22  ;;  %v315_v34 = vmul.f32 %v313_v21, %v304_v22  ;;  %v456_v22 = vpop.permute.xlu0 %455 }
  0xbc   :  { %v330_v37 = vmul.f32 %v325_v24, %v320_v30  ;;  %v331_v38 = vmul.f32 %v329_v29, %v320_v30 }
  0xbd   :  { %v316_v35 = vadd.f32 %v314_v33, %v300_v31  ;;  %v317_v36 = vadd.f32 %v315_v34, %v301_v32 }
  0xbf   :  { %v332_v43 = vadd.f32 %v330_v37, %v316_v35  ;;  %v333_v44 = vadd.f32 %v331_v38, %v317_v36  ;;  %v336_v45 = vpop.permute.xlu1 %335 }
  0xc0   :  { %v346_v46 = vmul.f32 %v341_v39, %v336_v45  ;;  %v347_v47 = vmul.f32 %v345_v40, %v336_v45 }
  0xc2   :  { %v348_v48 = vadd.f32 %v346_v46, %v332_v43  ;;  %v349_v49 = vadd.f32 %v347_v47, %v333_v44 }
  0xc4   :  { %v355_v50 = vpop.permute.xlu1 %354 }
  0xc5   :  { %v357_v51 = vadd.f32 %v355_v50, %v348_v48  ;;  %v358_v52 = vadd.f32 %v355_v50, %v349_v49 }
  0xc7   :  { %v359_v53 = vmax.f32 %v357_v51, 0.0  ;;  %v360_v54 = vmax.f32 %v358_v52, 0.0  ;;  %v507_v52 = vpop.permute.xlu0 %506 }
  0xc9   :  { %v371_v23 = vrot.slane %v359_v53, %v1111_v27  ;;  %v375_v55 = vrot.slane %v360_v54, %v1111_v27  ;;  %v380_v56 = vpop.permute.xlu1 %379  ;;  %v385_v57 = vrot.slane %v359_v53, %v1114_v28  ;;  %v389_v58 = vrot.slane %v360_v54, %v1114_v28 }
  0xca   :  { %v417_v62 = vrot.slane %v359_v53, %v1128_v41  ;;  %v421_v63 = vrot.slane %v360_v54, %v1128_v41  ;;  %v401_v0 = vrot.slane %v359_v53, %v1131_v42  ;;  %v405_v1 = vrot.slane %v360_v54, %v1131_v42 }
  0xcb   :  { %v376_v59 = vmul.f32 %v371_v23, %v366_v7  ;;  %v377_v3 = vmul.f32 %v375_v55, %v366_v7  ;;  %v390_v60 = vmul.f32 %v385_v57, %v380_v56  ;;  %v391_v61 = vmul.f32 %v389_v58, %v380_v56 }
  0xcc   :  { %v422_v11 = vmul.f32 %v417_v62, %v412_v2  ;;  %v423_v12 = vmul.f32 %v421_v63, %v412_v2 }
  0xcd   :  { %v392_v6 = vadd.f32 %v390_v60, %v376_v59  ;;  %v393_v8 = vadd.f32 %v391_v61, %v377_v3 }
  0xce   :  { %v396_v4 = vpop.permute.xlu1 %395 }
  0xcf   :  { %v406_v9 = vmul.f32 %v401_v0, %v396_v4  ;;  %v407_v10 = vmul.f32 %v405_v1, %v396_v4  ;;  %v548_v0 = vpop.permute.xlu0 %547 }
  0xd1   :  { %v408_v13 = vadd.f32 %v406_v9, %v392_v6  ;;  %v409_v14 = vadd.f32 %v407_v10, %v393_v8 }
  0xd3   :  { %v431_v15 = vpop.permute.xlu1 %430  ;;  %v424_v16 = vadd.f32 %v422_v11, %v408_v13  ;;  %v425_v17 = vadd.f32 %v423_v12, %v409_v14 }
  0xd5   :  { %v433_v18 = vadd.f32 %v431_v15, %v424_v16  ;;  %v434_v19 = vadd.f32 %v431_v15, %v425_v17 }
  0xd7   :  { %v435_v5 = vmax.f32 %v433_v18, 0.0  ;;  %v436_v20 = vmax.f32 %v434_v19, 0.0  ;;  %v442_v21 = vpop.permute.xlu1 %441 }
  0xd9   :  { %v447_v24 = vrot.slane %v435_v5, %v1111_v27  ;;  %v451_v29 = vrot.slane %v436_v20, %v1111_v27  ;;  %v461_v30 = vrot.slane %v435_v5, %v1114_v28  ;;  %v465_v31 = vrot.slane %v436_v20, %v1114_v28 }
  0xda   :  { %v477_v37 = vrot.slane %v435_v5, %v1131_v42  ;;  %v481_v38 = vrot.slane %v436_v20, %v1131_v42  ;;  %v493_v45 = vrot.slane %v435_v5, %v1128_v41  ;;  %v497_v46 = vrot.slane %v436_v20, %v1128_v41 }
  0xdb   :  { %v452_v32 = vmul.f32 %v447_v24, %v442_v21  ;;  %v453_v33 = vmul.f32 %v451_v29, %v442_v21  ;;  %v466_v34 = vmul.f32 %v461_v30, %v456_v22  ;;  %v467_v35 = vmul.f32 %v465_v31, %v456_v22  ;;  %v594_v30 = vpop.permute.xlu0 %593 }
  0xdc   :  { %v472_v36 = vpop.permute.xlu1 %471 }
  0xdd   :  { %v468_v39 = vadd.f32 %v466_v34, %v452_v32  ;;  %v469_v40 = vadd.f32 %v467_v35, %v453_v33  ;;  %v482_v43 = vmul.f32 %v477_v37, %v472_v36  ;;  %v483_v44 = vmul.f32 %v481_v38, %v472_v36 }
  0xdf   :  { %v484_v48 = vadd.f32 %v482_v43, %v468_v39  ;;  %v485_v49 = vadd.f32 %v483_v44, %v469_v40 }
  0xe1   :  { %v488_v47 = vpop.permute.xlu1 %487 }
  0xe2   :  { %v498_v50 = vmul.f32 %v493_v45, %v488_v47  ;;  %v499_v51 = vmul.f32 %v497_v46, %v488_v47  ;;  %v640_v46 = vpop.permute.xlu0 %639 }
  0xe4   :  { %v500_v53 = vadd.f32 %v498_v50, %v484_v48  ;;  %v501_v54 = vadd.f32 %v499_v51, %v485_v49 }
  0xe6   :  { %v509_v7 = vadd.f32 %v507_v52, %v500_v53  ;;  %v510_v23 = vadd.f32 %v507_v52, %v501_v54  ;;  %v518_v55 = vpop.permute.xlu1 %517 }
  0xe8   :  { %v511_v56 = vmax.f32 %v509_v7, 0.0  ;;  %v512_v57 = vmax.f32 %v510_v23, 0.0 }
  0xea   :  { %v523_v58 = vrot.slane %v511_v56, %v1111_v27  ;;  %v527_v59 = vrot.slane %v512_v57, %v1111_v27  ;;  %v537_v3 = vrot.slane %v511_v56, %v1114_v28  ;;  %v541_v60 = vrot.slane %v512_v57, %v1114_v28 }
  0xeb   :  { %v532_v61 = vpop.permute.xlu1 %531  ;;  %v553_v62 = vrot.slane %v511_v56, %v1131_v42  ;;  %v557_v63 = vrot.slane %v512_v57, %v1131_v42  ;;  %v569_v12 = vrot.slane %v511_v56, %v1128_v41  ;;  %v573_v13 = vrot.slane %v512_v57, %v1128_v41 }
  0xec   :  { %v528_v1 = vmul.f32 %v523_v58, %v518_v55  ;;  %v529_v2 = vmul.f32 %v527_v59, %v518_v55  ;;  %v542_v4 = vmul.f32 %v537_v3, %v532_v61  ;;  %v543_v6 = vmul.f32 %v541_v60, %v532_v61  ;;  %v684_v61 = vpop.permute.xlu0 %683 }
  0xed   :  { %v558_v10 = vmul.f32 %v553_v62, %v548_v0  ;;  %v559_v11 = vmul.f32 %v557_v63, %v548_v0 }
  0xee   :  { %v544_v8 = vadd.f32 %v542_v4, %v528_v1  ;;  %v545_v9 = vadd.f32 %v543_v6, %v529_v2 }
  0xf0   :  { %v560_v14 = vadd.f32 %v558_v10, %v544_v8  ;;  %v561_v15 = vadd.f32 %v559_v11, %v545_v9  ;;  %v564_v16 = vpop.permute.xlu1 %563 }
  0xf1   :  { %v574_v17 = vmul.f32 %v569_v12, %v564_v16  ;;  %v575_v18 = vmul.f32 %v573_v13, %v564_v16 }
  0xf3   :  { %v576_v19 = vadd.f32 %v574_v17, %v560_v14  ;;  %v577_v5 = vadd.f32 %v575_v18, %v561_v15 }
  0xf5   :  { %v583_v20 = vpop.permute.xlu1 %582 }
  0xf6   :  { %v585_v21 = vadd.f32 %v583_v20, %v576_v19  ;;  %v586_v22 = vadd.f32 %v583_v20, %v577_v5  ;;  %v735_v19 = vpop.permute.xlu0 %734 }
  0xf8   :  { %v587_v24 = vmax.f32 %v585_v21, 0.0  ;;  %v588_v29 = vmax.f32 %v586_v22, 0.0 }
  0xfa   :  { %v599_v31 = vrot.slane %v587_v24, %v1111_v27  ;;  %v603_v32 = vrot.slane %v588_v29, %v1111_v27  ;;  %v608_v33 = vpop.permute.xlu1 %607  ;;  %v613_v34 = vrot.slane %v587_v24, %v1114_v28  ;;  %v617_v35 = vrot.slane %v588_v29, %v1114_v28 }
  0xfb   :  { %v645_v40 = vrot.slane %v587_v24, %v1128_v41  ;;  %v649_v43 = vrot.slane %v588_v29, %v1128_v41  ;;  %v629_v44 = vrot.slane %v587_v24, %v1131_v42  ;;  %v633_v45 = vrot.slane %v588_v29, %v1131_v42 }
  0xfc   :  { %v604_v36 = vmul.f32 %v599_v31, %v594_v30  ;;  %v605_v37 = vmul.f32 %v603_v32, %v594_v30  ;;  %v618_v38 = vmul.f32 %v613_v34, %v608_v33  ;;  %v619_v39 = vmul.f32 %v617_v35, %v608_v33  ;;  %v773_v32 = vpop.permute.xlu0 %772 }
  0xfd   :  { %v650_v52 = vmul.f32 %v645_v40, %v640_v46  ;;  %v651_v53 = vmul.f32 %v649_v43, %v640_v46  ;;  %v778_v35 = vrot.slane %v773_v32, %v1111_v27 }
  0xfe   :  { %v620_v48 = vadd.f32 %v618_v38, %v604_v36  ;;  %v621_v49 = vadd.f32 %v619_v39, %v605_v37 }
  0xff   :  { %v624_v47 = vpop.permute.xlu1 %623 }
 0x100   :  { %v634_v50 = vmul.f32 %v629_v44, %v624_v47  ;;  %v635_v51 = vmul.f32 %v633_v45, %v624_v47 }
 0x102   :  { %v636_v54 = vadd.f32 %v634_v50, %v620_v48  ;;  %v637_v7 = vadd.f32 %v635_v51, %v621_v49  ;;  %v955_v48 = vmov 1966171168  }
 0x103   :  { %v823_v49 = vunpack.c.l.s4 %v955_v48 }
 0x104   :  { %v659_v23 = vpop.permute.xlu1 %658  ;;  %v652_v55 = vadd.f32 %v650_v52, %v636_v54  ;;  %v653_v56 = vadd.f32 %v651_v53, %v637_v7 }
 0x106   :  { %v661_v57 = vadd.f32 %v659_v23, %v652_v55  ;;  %v662_v58 = vadd.f32 %v659_v23, %v653_v56  ;;  %v824_v55 = vunpack.c.0.s8 %v823_v49 }
 0x108   :  { %v663_v59 = vmax.f32 %v661_v57, 0.0  ;;  %v664_v3 = vmax.f32 %v662_v58, 0.0  ;;  %v670_v60 = vpop.permute.xlu1 %669 }
 0x10a   :  { %v675_v62 = vrot.slane %v663_v59, %v1111_v27  ;;  %v679_v63 = vrot.slane %v664_v3, %v1111_v27  ;;  %v689_v0 = vrot.slane %v663_v59, %v1114_v28  ;;  %v693_v1 = vrot.slane %v664_v3, %v1114_v28 }
 0x10b   :  { %v705_v10 = vrot.slane %v663_v59, %v1131_v42  ;;  %v709_v11 = vrot.slane %v664_v3, %v1131_v42  ;;  %v721_v16 = vrot.slane %v663_v59, %v1128_v41  ;;  %v725_v17 = vrot.slane %v664_v3, %v1128_v41 }
 0x10c   :  { %v680_v2 = vmul.f32 %v675_v62, %v670_v60  ;;  %v681_v4 = vmul.f32 %v679_v63, %v670_v60  ;;  %v694_v6 = vmul.f32 %v689_v0, %v684_v61  ;;  %v695_v8 = vmul.f32 %v693_v1, %v684_v61 }
 0x10d   :  { %v700_v9 = vpop.permute.xlu1 %699  ;;  %v827_v1 = vsub.s32 %v824_v55, %v1107_v26 }
 0x10e   :  { %v696_v12 = vadd.f32 %v694_v6, %v680_v2  ;;  %v697_v13 = vadd.f32 %v695_v8, %v681_v4  ;;  %v710_v14 = vmul.f32 %v705_v10, %v700_v9  ;;  %v711_v15 = vmul.f32 %v709_v11, %v700_v9 }
 0x110   :  { %v712_v28 = vadd.f32 %v710_v14, %v696_v12  ;;  %v713_v5 = vadd.f32 %v711_v15, %v697_v13 }
 0x112   :  { %v716_v18 = vpop.permute.xlu1 %715 }
 0x113   :  { %v726_v20 = vmul.f32 %v721_v16, %v716_v18  ;;  %v727_v21 = vmul.f32 %v725_v17, %v716_v18 }
 0x115   :  { %v728_v22 = vadd.f32 %v726_v20, %v712_v28  ;;  %v729_v24 = vadd.f32 %v727_v21, %v713_v5 }
 0x117   :  { %v737_v29 = vadd.f32 %v735_v19, %v728_v22  ;;  %v738_v30 = vadd.f32 %v735_v19, %v729_v24  ;;  %v755_v31 = vpop.permute.xlu1 %754 }
 0x118   :  { %v760_v42 = vrot.slane %v755_v31, %v1111_v27 }
 0x119   :  { %v739_v33 = vmax.f32 %v737_v29, 0.0  ;;  %v740_v34 = vmax.f32 %v738_v30, 0.0 }
 0x11b   :  { %v761_v36 = vmul.f32 %v760_v42, %v739_v33  ;;  %v762_v41 = vmul.f32 %v760_v42, %v740_v34  ;;  %v779_v39 = vmul.f32 %v778_v35, %v739_v33  ;;  %v780_v40 = vmul.f32 %v778_v35, %v740_v34 }
 0x11c   :  { %v745_v37 = vpop.permute.xlu1 %744 }
 0x11d   :  { %v750_v38 = vrot.slane %v745_v37, %v1111_v27  ;;  %v765_v43 = vrot.slane %v761_v36, 1  ;;  %v766_v44 = vrot.slane %v762_v41, 1  ;;  %v783_v53 = vrot.slane %v779_v39, 2 }
 0x11e   :  { %v784_v54 = vrot.slane %v780_v40, 2 }
 0x11f   :  { %v751_v45 = vmul.f32 %v750_v38, %v739_v33  ;;  %v752_v46 = vmul.f32 %v750_v38, %v740_v34 }
 0x121   :  { %v791_v47 = vpop.permute.xlu1 %790  ;;  %v769_v50 = vadd.f32 %v765_v43, %v751_v45  ;;  %v770_v51 = vadd.f32 %v766_v44, %v752_v46 }
 0x122   :  { %v796_v52 = vrot.slane %v791_v47, %v1111_v27 }
 0x123   :  { %v787_v59 = vadd.f32 %v783_v53, %v769_v50  ;;  %v788_v3 = vadd.f32 %v784_v54, %v770_v51 }
 0x124   :  { %v797_v7 = vmul.f32 %v796_v52, %v739_v33  ;;  %v798_v23 = vmul.f32 %v796_v52, %v740_v34 }
 0x126   :  { %v801_v56 = vrot.slane %v797_v7, 3  ;;  %v802_v57 = vrot.slane %v798_v23, 3  ;;  %v811_v58 = vpop.permute.xlu1 %810 }
 0x127   :  { %v816_v60 = vrot.slane %v811_v58, %v1111_v27 }
 0x128   :  { %v805_v61 = vadd.f32 %v801_v56, %v787_v59  ;;  %v806_v62 = vadd.f32 %v802_v57, %v788_v3 }
 0x12a   :  { %v817_v63 = vadd.f32 %v816_v60, %v805_v61  ;;  %v818_v0 = vadd.f32 %v816_v60, %v806_v62 }
 0x12c   :  { %v821_v2 = vcombine.low %v817_v63, %v818_v0 }
 0x12e   :  { %v828_v4 = vrot.slane %v821_v2, %v827_v1 }
 0x130   :  { %v835_v6 = vrot.slane %v828_v4, %v827_v1 }
 0x132   :  { %841 = vst.msk [vmem:[#allocation3] sm:$0x3] %vm839_vm0, %v835_v6 }
 0x133   :  { %938 = shalt.err (!%p935_p4)
}
 0x134   :  { %s939_s19 = scalar_lea.hbm %s1242_s7, 32 }
 0x135   :  { %p940_p5 = scmp.ne.s32.totalorder %s1242_s7, %s939_s19  ;;  %p943_p6 = scmp.lt.u32.totalorder %s939_s19, %s1242_s7 }
 0x137   :  { %p945_p7 = pnand %p943_p6, %p940_p5 }
 0x139   :  { %948 = shalt.err (!%p945_p7)
}
 0x13a   :  { %851 = dma.vmem_to_hbm [thread:$0]  %s849_s4, 32, %s1242_s7, [#allocation4]  }
 0x13b   :  { %949 = dma.done.wait [#allocation4], 32  }
 0x13c   :  { %950 = vsyncadd [#allocation4], 4294967264 }
 0x13d   :  { %855 = vsyncpa [#allocation4], 1 }

</bundles_post_ra>
